<compile_context>
chip_gen: v7x
topology: tpu7x:2x2x1
jax: 0.10.0
libtpu: 0.0.40
codegen_flags: <defaults>
</compile_context>

<pallas_src>
import jax
import jax.numpy as jnp
from jax.experimental import pallas as pl
from jax.experimental.pallas import tpu as pltpu


def _leaky_relu(x, negative_slope=0.2):
    return jnp.where(x > 0, x, negative_slope * x)


def _discriminator_kernel(xt_ref, w0_ref, b0_ref, w1_ref, b1_ref, w2_ref, b2_ref,
                          o_ref):
    # Dropout layers are identity in eval mode.
    # Activations are (features, batch): batch on the 128-lane axis throughout,
    # so all VPU work is lane-dense and the final (1, tb) store needs no
    # transpose.
    mm_dtype = w0_ref.dtype

    # Layer 0: Linear(emb -> hid) + LeakyReLU(0.2):  W0 @ x  -> (hid, tb)
    h = jnp.dot(w0_ref[...], xt_ref[...], preferred_element_type=jnp.float32)
    h = _leaky_relu(h + b0_ref[...])

    # Layer 1: Linear(hid -> hid) + LeakyReLU(0.2):  W1 @ h  -> (hid, tb)
    h = jnp.dot(w1_ref[...], h.astype(mm_dtype),
                preferred_element_type=jnp.float32)
    h = _leaky_relu(h + b1_ref[...])

    # Layer 2: Linear(hid -> 1) + Sigmoid:  W2 @ h -> (1, tb), lane-dense.
    logits = jnp.dot(w2_ref[...], h.astype(mm_dtype),
                     preferred_element_type=jnp.float32)
    o_ref[...] = jax.nn.sigmoid(logits + b2_ref[0])   # scalar bias from SMEM


def prepare_params(params, matmul_dtype=jnp.float32):
    """One-time layout preparation (hoisted out of the per-call path).

    Weights keep their PyTorch-native (out, in) layout because the kernel
    computes W @ act on a (features, batch) activation tile. Biases become
    (hid, 1) columns so they broadcast along the lane (batch) axis. The final
    bias becomes a (1,) scalar destined for SMEM.

    matmul_dtype=jnp.bfloat16 is recommended on v6e/v7x (native bf16 MXU,
    halves the x HBM stream); elementwise math stays f32 either way.
    """
    return {
        "w0": jnp.asarray(params["w0"], matmul_dtype),                 # (hid, emb)
        "b0": jnp.asarray(params["b0"], jnp.float32).reshape(-1, 1),   # (hid, 1)
        "w1": jnp.asarray(params["w1"], matmul_dtype),                 # (hid, hid)
        "b1": jnp.asarray(params["b1"], jnp.float32).reshape(-1, 1),   # (hid, 1)
        "w2": jnp.asarray(params["w2"], matmul_dtype),                 # (1, hid)
        "b2": jnp.asarray(params["b2"], jnp.float32).reshape(1),       # (1,) -> SMEM
    }


def _batch_tiling(B):
    """Pick (B_pad, tb) for the batch (lane) axis.

    * B < 256: one full-extent tile (block == array, no padding, no (8,128)
      constraint, VMEM use is tiny).
    * B >= 256: pad to a multiple of 128 lanes and tile at 512 / 256 / 128
      columns such that the grid always has >= 2 steps -> the "parallel" batch
      axis can be sharded across v7x's two TensorCores, tiles stay well under
      v7x's 64 MiB VMEM, and the x stream is double-buffered by BlockSpec.
    """
    LANE = 128
    if B < 256:
        return B, B
    B_pad = -(-B // LANE) * LANE
    if B_pad % 512 == 0 and B_pad // 512 >= 2:
        tb = 512
    elif B_pad == 512:
        tb = 256
    else:
        tb = LANE
    return B_pad, tb


def discriminator_forward(x, prepared):
    """x: (B, emb_dim) float32. prepared: output of prepare_params().

    Returns (B,) float32 probabilities, matching .view(-1).
    """
    B, emb = x.shape
    hid = prepared["w0"].shape[0]
    mm_dtype = prepared["w0"].dtype

    B_pad, tb = _batch_tiling(B)
    xt = x.T.astype(mm_dtype)                  # (emb, B): feature-major
    if B_pad != B:
        xt = jnp.pad(xt, ((0, 0), (0, B_pad - B)))
    grid = (B_pad // tb,)

    vmem = pltpu.MemorySpace.VMEM
    smem = pltpu.MemorySpace.SMEM

    out = pl.pallas_call(
        _discriminator_kernel,
        out_shape=jax.ShapeDtypeStruct((1, B_pad), jnp.float32),
        grid_spec=pltpu.PrefetchScalarGridSpec(
            num_scalar_prefetch=0,
            grid=grid,
            in_specs=[
                # Activations stream over the batch grid axis (lane axis).
                pl.BlockSpec((emb, tb), lambda i: (0, i), memory_space=vmem),
                # Weights / biases: constant index_map -> VMEM-resident.
                pl.BlockSpec((hid, emb), lambda i: (0, 0), memory_space=vmem),
                pl.BlockSpec((hid, 1), lambda i: (0, 0), memory_space=vmem),
                pl.BlockSpec((hid, hid), lambda i: (0, 0), memory_space=vmem),
                pl.BlockSpec((hid, 1), lambda i: (0, 0), memory_space=vmem),
                pl.BlockSpec((1, hid), lambda i: (0, 0), memory_space=vmem),
                # Final bias: single scalar, lives in SMEM.
                pl.BlockSpec(memory_space=smem),
            ],
            out_specs=pl.BlockSpec((1, tb), lambda i: (0, i), memory_space=vmem),
        ),
        compiler_params=pltpu.CompilerParams(
            dimension_semantics=("parallel",)),
    )(xt, prepared["w0"], prepared["b0"], prepared["w1"], prepared["b1"],
      prepared["w2"], prepared["b2"])
    return out[0, :B]


def init_params(key, emb_dim, hid_dim, dis_layers):
    """Deterministic synthetic init. Shapes match the PyTorch module:
       layer i: Linear(emb_dim if i==0 else hid, 1 if i==dis_layers else hid)."""
    assert dis_layers == 2, "this script instantiates dis_layers=2"
    k0, k1, k2, k3, k4, k5 = jax.random.split(key, 6)
    scale = 0.1
    return {
        "w0": scale * jax.random.normal(k0, (hid_dim, emb_dim), jnp.float32),
        "b0": scale * jax.random.normal(k1, (hid_dim,), jnp.float32),
        "w1": scale * jax.random.normal(k2, (hid_dim, hid_dim), jnp.float32),
        "b1": scale * jax.random.normal(k3, (hid_dim,), jnp.float32),
        "w2": scale * jax.random.normal(k4, (1, hid_dim), jnp.float32),
        "b2": scale * jax.random.normal(k5, (1,), jnp.float32),
    }


def _reference_forward(x, params):
    """Plain-JAX reference of the PyTorch forward (eval mode)."""
    h = x @ params["w0"].T + params["b0"]
    h = jnp.where(h > 0, h, 0.2 * h)
    h = h @ params["w1"].T + params["b1"]
    h = jnp.where(h > 0, h, 0.2 * h)
    logits = h @ params["w2"].T + params["b2"]
    return jax.nn.sigmoid(logits).reshape(-1)


if __name__ == "__main__":
    # Small config: params.emb_dim=32, params.dis_layers=2, params.dis_hid_dim=32
    B, EMB, HID, LAYERS = 8, 32, 32, 2

    key = jax.random.PRNGKey(0)
    kx, kp = jax.random.split(key)
    x = jax.random.normal(kx, (B, EMB), jnp.float32)
    params = init_params(kp, EMB, HID, LAYERS)

    # Layout prep (reshapes / dtype) done once, outside the forward path.
    prepared = prepare_params(params)            # f32 matmuls for exact check

    out = jax.block_until_ready(discriminator_forward(x, prepared))
    ref = _reference_forward(x, params)
    assert out.shape == (B,)
    assert jnp.allclose(out, ref, atol=1e-5, rtol=1e-5), (out, ref)

    # Also exercise the padded / tiled batch path (B not a tile multiple).
    B2 = 300
    x2 = jax.random.normal(jax.random.PRNGKey(1), (B2, EMB), jnp.float32)
    out2 = jax.block_until_ready(discriminator_forward(x2, prepared))
    ref2 = _reference_forward(x2, params)
    assert out2.shape == (B2,)
    assert jnp.allclose(out2, ref2, atol=1e-5, rtol=1e-5), (out2, ref2)

    print("KERNEL_OK")
</pallas_src>

<mosaic_0001>
module attributes {stable_mosaic.version = 11 : i64} {
  func.func @_discriminator_kernel(%arg0: i32, %arg1: memref<32x8xf32, #tpu.memory_space<vmem>>, %arg2: memref<32x32xf32, #tpu.memory_space<vmem>>, %arg3: memref<32x1xf32, #tpu.memory_space<vmem>>, %arg4: memref<32x32xf32, #tpu.memory_space<vmem>>, %arg5: memref<32x1xf32, #tpu.memory_space<vmem>>, %arg6: memref<1x32xf32, #tpu.memory_space<vmem>>, %arg7: memref<1xf32, #tpu.memory_space<smem>>, %arg8: memref<1x8xf32, #tpu.memory_space<vmem>>) attributes {dimension_semantics = [#tpu.dimension_semantics<parallel>], iteration_bounds = array<i64: 1>, scalar_prefetch = 0 : i64, scratch_operands = 0 : i64, tpu.core_type = #tpu.core_type<tc>, window_params = [{transform_indices = @transform_0, window_bounds = array<i64: 32, 8>}, {pipeline_mode = #tpu.pipeline_mode<synchronous>, transform_indices = @transform_1, window_bounds = array<i64: 32, 32>}, {pipeline_mode = #tpu.pipeline_mode<synchronous>, transform_indices = @transform_2, window_bounds = array<i64: 32, 1>}, {pipeline_mode = #tpu.pipeline_mode<synchronous>, transform_indices = @transform_3, window_bounds = array<i64: 32, 32>}, {pipeline_mode = #tpu.pipeline_mode<synchronous>, transform_indices = @transform_4, window_bounds = array<i64: 32, 1>}, {pipeline_mode = #tpu.pipeline_mode<synchronous>, transform_indices = @transform_5, window_bounds = array<i64: 1, 32>}, {transform_indices = @transform_6, window_bounds = array<i64: 1>}, {transform_indices = @transform_7, window_bounds = array<i64: 1, 8>}]} {
    %c0 = arith.constant 0 : index
    %c0_0 = arith.constant 0 : index
    %0 = vector.load %arg2[%c0, %c0_0] : memref<32x32xf32, #tpu.memory_space<vmem>>, vector<32x32xf32>
    %c0_1 = arith.constant 0 : index
    %c0_2 = arith.constant 0 : index
    %1 = vector.load %arg1[%c0_1, %c0_2] : memref<32x8xf32, #tpu.memory_space<vmem>>, vector<32x8xf32>
    %cst = arith.constant dense<0.000000e+00> : vector<32x8xf32>
    %2 = tpu.matmul %0, %1, %cst {dimension_numbers = #tpu.dot_dimension_numbers<[1], [0], [0], [1], [0, 0, 1, 1], [], []>} : vector<32x32xf32>, vector<32x8xf32>, vector<32x8xf32> -> vector<32x8xf32>
    %c0_3 = arith.constant 0 : index
    %c0_4 = arith.constant 0 : index
    %3 = vector.load %arg3[%c0_3, %c0_4] : memref<32x1xf32, #tpu.memory_space<vmem>>, vector<32x1xf32>
    %4 = vector.broadcast %3 : vector<32x1xf32> to vector<32x8xf32>
    %5 = arith.addf %2, %4 : vector<32x8xf32>
    %cst_5 = arith.constant 0.000000e+00 : f32
    %6 = vector.broadcast %cst_5 : f32 to vector<32x8xf32>
    %7 = arith.cmpf ogt, %5, %6 : vector<32x8xf32>
    %cst_6 = arith.constant 2.000000e-01 : f32
    %8 = vector.broadcast %cst_6 : f32 to vector<32x8xf32>
    %9 = arith.mulf %8, %5 : vector<32x8xf32>
    %10 = arith.select %7, %5, %9 : vector<32x8xi1>, vector<32x8xf32>
    %c0_7 = arith.constant 0 : index
    %c0_8 = arith.constant 0 : index
    %11 = vector.load %arg4[%c0_7, %c0_8] : memref<32x32xf32, #tpu.memory_space<vmem>>, vector<32x32xf32>
    %cst_9 = arith.constant dense<0.000000e+00> : vector<32x8xf32>
    %12 = tpu.matmul %11, %10, %cst_9 {dimension_numbers = #tpu.dot_dimension_numbers<[1], [0], [0], [1], [0, 0, 1, 1], [], []>} : vector<32x32xf32>, vector<32x8xf32>, vector<32x8xf32> -> vector<32x8xf32>
    %c0_10 = arith.constant 0 : index
    %c0_11 = arith.constant 0 : index
    %13 = vector.load %arg5[%c0_10, %c0_11] : memref<32x1xf32, #tpu.memory_space<vmem>>, vector<32x1xf32>
    %14 = vector.broadcast %13 : vector<32x1xf32> to vector<32x8xf32>
    %15 = arith.addf %12, %14 : vector<32x8xf32>
    %cst_12 = arith.constant 0.000000e+00 : f32
    %16 = vector.broadcast %cst_12 : f32 to vector<32x8xf32>
    %17 = arith.cmpf ogt, %15, %16 : vector<32x8xf32>
    %cst_13 = arith.constant 2.000000e-01 : f32
    %18 = vector.broadcast %cst_13 : f32 to vector<32x8xf32>
    %19 = arith.mulf %18, %15 : vector<32x8xf32>
    %20 = arith.select %17, %15, %19 : vector<32x8xi1>, vector<32x8xf32>
    %c0_14 = arith.constant 0 : index
    %c0_15 = arith.constant 0 : index
    %21 = vector.load %arg6[%c0_14, %c0_15] : memref<1x32xf32, #tpu.memory_space<vmem>>, vector<1x32xf32>
    %cst_16 = arith.constant dense<0.000000e+00> : vector<1x8xf32>
    %22 = tpu.matmul %21, %20, %cst_16 {dimension_numbers = #tpu.dot_dimension_numbers<[1], [0], [0], [1], [0, 0, 1, 1], [], []>} : vector<1x32xf32>, vector<32x8xf32>, vector<1x8xf32> -> vector<1x8xf32>
    %c0_17 = arith.constant 0 : index
    %23 = memref.load %arg7[%c0_17] : memref<1xf32, #tpu.memory_space<smem>>
    %24 = vector.broadcast %23 : f32 to vector<1x8xf32>
    %25 = arith.addf %22, %24 : vector<1x8xf32>
    %26 = arith.negf %25 : vector<1x8xf32>
    %27 = math.exp %26 : vector<1x8xf32>
    %cst_18 = arith.constant 1.000000e+00 : f32
    %28 = vector.broadcast %cst_18 : f32 to vector<1x8xf32>
    %29 = arith.addf %28, %27 : vector<1x8xf32>
    %30 = arith.divf %28, %29 : vector<1x8xf32>
    %c0_19 = arith.constant 0 : index
    %c0_20 = arith.constant 0 : index
    %31 = vector.load %arg8[%c0_19, %c0_20] : memref<1x8xf32, #tpu.memory_space<vmem>>, vector<1x8xf32>
    tpu.vector_store %arg8[%c0_19, %c0_20], %30 {strides = array<i32>} : memref<1x8xf32, #tpu.memory_space<vmem>>, vector<1x8xf32>,
    return
  }
  func.func @transform_0(%arg0: i32) -> (i32, i32) {
    %c0_i32 = arith.constant 0 : i32
    %c0_i32_0 = arith.constant 0 : i32
    return %c0_i32, %arg0 : i32, i32
  }
  func.func @transform_1(%arg0: i32) -> (i32, i32) {
    %c0_i32 = arith.constant 0 : i32
    %c0_i32_0 = arith.constant 0 : i32
    %c0_i32_1 = arith.constant 0 : i32
    return %c0_i32, %c0_i32_0 : i32, i32
  }
  func.func @transform_2(%arg0: i32) -> (i32, i32) {
    %c0_i32 = arith.constant 0 : i32
    %c0_i32_0 = arith.constant 0 : i32
    %c0_i32_1 = arith.constant 0 : i32
    return %c0_i32, %c0_i32_0 : i32, i32
  }
  func.func @transform_3(%arg0: i32) -> (i32, i32) {
    %c0_i32 = arith.constant 0 : i32
    %c0_i32_0 = arith.constant 0 : i32
    %c0_i32_1 = arith.constant 0 : i32
    return %c0_i32, %c0_i32_0 : i32, i32
  }
  func.func @transform_4(%arg0: i32) -> (i32, i32) {
    %c0_i32 = arith.constant 0 : i32
    %c0_i32_0 = arith.constant 0 : i32
    %c0_i32_1 = arith.constant 0 : i32
    return %c0_i32, %c0_i32_0 : i32, i32
  }
  func.func @transform_5(%arg0: i32) -> (i32, i32) {
    %c0_i32 = arith.constant 0 : i32
    %c0_i32_0 = arith.constant 0 : i32
    %c0_i32_1 = arith.constant 0 : i32
    return %c0_i32, %c0_i32_0 : i32, i32
  }
  func.func @transform_6(%arg0: i32) -> i32 {
    %c0_i32 = arith.constant 0 : i32
    %c0_i32_0 = arith.constant 0 : i32
    return %c0_i32 : i32
  }
  func.func @transform_7(%arg0: i32) -> (i32, i32) {
    %c0_i32 = arith.constant 0 : i32
    %c0_i32_0 = arith.constant 0 : i32
    return %c0_i32, %arg0 : i32, i32
  }
}

</mosaic_0001>

<bundles_post_ra>
// kernel: tpu_custom_call.1
= control target key start
LH: loop header
LB: loop body
LE: loop exit
PB: predicated region body
PF: predicated region fallthrough
CT: control target
= control target key end

     0   :  { %vm60_vm0 = vcmask 261120   ;;  %v532_v6 = vmov 0   ;;  %s664_s0 = inlined_call_operand.vmem [shape: f32[32,8], index: 0, kind: input, shape index: {}]   ;;  %s665_s1 = inlined_call_operand.vmem [shape: f32[32,32], index: 1, kind: input, shape index: {}]   ;;  %s666_s2 = inlined_call_operand.vmem [shape: f32[32,1], index: 2, kind: input, shape index: {}]   ;;  %s667_s3 = inlined_call_operand.vmem [shape: f32[32,32], index: 3, kind: input, shape index: {}]   ;;  %s668_s4 = inlined_call_operand.vmem [shape: f32[32,1], index: 4, kind: input, shape index: {}]   ;;  %s669_s5 = inlined_call_operand.vmem [shape: f32[1,32], index: 5, kind: input, shape index: {}]   ;;  %s670_s6 = inlined_call_operand.<no memory space> [shape: f32[1], index: 6, kind: input, shape index: {}]   ;;  %s671_s7 = inlined_call_operand.hbm [shape: f32[1,8], index: 7, kind: output, shape index: {}]  }
   0x1   :  { %v32_v0 = vld [vmem:[%s664_s0] sm:$0xff]  ;;  %v33_v1 = vld [vmem:[%s664_s0 + $0x8] sm:$0xff]  ;;  %v34_v2 = vld [vmem:[%s664_s0 + $0x10] sm:$0xff]  ;;  %502 = vset.pattern.permute.xlu0 %v532_v6  ;;  %503 = vset.pattern.permute.xlu1 %v532_v6 }
   0x2   :  { %v475_v3 = vpack.c.bf16 %v33_v1, %v32_v0  ;;  %v35_v4 = vld [vmem:[%s664_s0 + $0x18] sm:$0xff]  ;;  %v28_v5 = vld [vmem:[%s665_s1] sm:$0xff]  ;;  %v38_v9 = vld [vmem:[%s666_s2 + $0x10] sm:$0xff] }
   0x3   :  { %v479_v7 = vpack.c.bf16 %v35_v4, %v34_v2  ;;  %444 = vmatprep.mubr.msk.f32.mxu0 %vm60_vm0, %v28_v5  ;;  %v36_v8 = vld [vmem:[%s666_s2] sm:$0xff]  ;;  %52 = vperm.xlu1 %503, %v38_v9   ;;  %v37_v10 = vld [vmem:[%s666_s2 + $0x8] sm:$0xff]  ;;  %v39_v11 = vld [vmem:[%s666_s2 + $0x18] sm:$0xff] }
   0x4   :  { %476 = vmatprep.subr.bf16.mxu0 %v475_v3  ;;  %42 = vperm.xlu0 %502, %v36_v8  }
   0x5   :  { %478 = vmatpush3.bf16.msra.mxu0 %v475_v3 }
   0x6   :  { %480 = vmatprep.subr.bf16.mxu0 %v479_v7 }
   0x7   :  { %13 = vsyncpa [#allocation4], 0  ;;  %v29_v12 = vld [vmem:[%s665_s1 + $0x8] sm:$0xff]  ;;  %57 = vperm.xlu1 %503, %v39_v11   ;;  %v174_v13 = vld [vmem:[%s668_s4] sm:$0xff]  ;;  %v533_v45 = vmov 0.0|0.0   ;;  %vm534_vm5 = vmmov 0   ;;  %v309_v6 = vstv %s670_s6 }
   0x8   :  { %47 = vperm.xlu0 %502, %v37_v10   ;;  %v30_v14 = vld [vmem:[%s665_s1 + $0x10] sm:$0xff]  ;;  %v175_v15 = vld [vmem:[%s668_s4 + $0x8] sm:$0xff]  ;;  %v31_v16 = vld [vmem:[%s665_s1 + $0x18] sm:$0xff]  ;;  %v535_v46 = vmov 0.0   ;;  %s536_s16 = smov [#allocation3]   ;;  %vm389_vm10 = vcmask 57344  }
   0x9   :  { %482 = vmatpush3.bf16.msra.mxu0 %v479_v7  ;;  %v176_v17 = vld [vmem:[%s668_s4 + $0x10] sm:$0xff]  ;;  %v177_v18 = vld [vmem:[%s668_s4 + $0x18] sm:$0xff]  ;;  %v170_v19 = vld [vmem:[%s667_s3] sm:$0xff]  ;;  %s397_s17 = sshll.u32 %s536_s16, 4  ;;  %s398_s17 = int_to_ptr.vmem [resolvable:$true] %s397_s17 }
   0xa   :  { %458 = vmatprep.mubr.msk.f32.mxu1 %vm60_vm0, %v170_v19  ;;  %v171_v42 = vld [vmem:[%s667_s3 + $0x8] sm:$0xff]  ;;  %v172_v43 = vld [vmem:[%s667_s3 + $0x10] sm:$0xff]  ;;  %v173_v44 = vld [vmem:[%s667_s3 + $0x18] sm:$0xff]  ;;  %491 = vmatprep.subr.bf16.mxu0 %v533_v45  ;;  %s512_s18 = scalar_lea.vmem %s398_s17, 32  ;;  %p513_p1 = scmp.lt.s32.totalorder %s398_s17, %s398_s17 }
   0xb   :  { %185 = vperm.xlu1 %503, %v175_v15   ;;  %v307_v5 = vld [vmem:[%s669_s5] sm:$0x1]  ;;  %s508_s5 = scalar_lea.vmem %s398_s17, 16 }
   0xc   :  { %445 = vmatmul.mubr.msk.f32.vlgmr.msra.gmra.mrb[0].mxu0 %vm60_vm0, %v29_v12  ;;  %180 = vperm.xlu0 %502, %v174_v13   ;;  %p509_p0 = scmp.ne.s32.totalorder %s398_s17, %s508_s5  ;;  %p514_p2 = scmp.lt.s32.totalorder %s512_s18, %s508_s5 }
   0xd   :  { %447 = vmatprep.mubr.msk.f32.mxu0 %vm60_vm0, %v30_v14 }
   0xe   :  { %p515_p3 = por %p514_p2, %p513_p1 }
   0xf   :  { %195 = vperm.xlu1 %503, %v177_v18  }
  0x10   :  { %448 = vmatmul.mubr.msk.f32.gmra.mrb[2].mxu0 %vm60_vm0, %v31_v16  ;;  %190 = vperm.xlu0 %502, %v176_v17   ;;  %p516_p4 = pnand %p515_p3, %p509_p0 }
  0x11   :  { %472 = vmatprep.mubr.msk.f32.mxu0 %vm534_vm5, %v535_v46 }
  0x82   :  { %v53_v21 = vpop.permute.xlu1 %52 }
  0x83   :  { %v43_v20 = vpop.permute.xlu0 %42 }
  0x86   :  { %v58_v28 = vpop.permute.xlu1 %57 }
  0x87   :  { %v48_v22 = vpop.permute.xlu0 %47 }
  0x8a   :  { %v186_v47 = vpop.permute.xlu1 %185 }
  0x8b   :  { %v181_v48 = vpop.permute.xlu0 %180 }
  0x8e   :  { %v196_v54 = vpop.permute.xlu1 %195 }
  0x8f   :  { %v191_v57 = vpop.permute.xlu0 %190 }
  0xdf   :  { %v446_v23 = vpop.f32.mrb[0].mxu0 }
  0xe0   :  { %v145_v24 = vadd.f32 %v446_v23, %v48_v22  ;;  %v139_v25 = vpop.f32.mrb[1].mxu0 }
  0xe1   :  { %v140_v26 = vadd.f32 %v139_v25, %v43_v20 }
  0xe2   :  { %v163_v27 = vmul.f32 0.2, %v145_v24  ;;  %vm159_vm1 = vcmp.gt.f32.partialorder %v145_v24, 0.0 }
  0xe3   :  { %v162_v29 = vmul.f32 0.2, %v140_v26  ;;  %v449_v30 = vpop.f32.mrb[2].mxu0  ;;  %vm158_vm2 = vcmp.gt.f32.partialorder %v140_v26, 0.0 }
  0xe4   :  { %v155_v31 = vadd.f32 %v449_v30, %v58_v28  ;;  %v149_v32 = vpop.f32.mrb[3].mxu0  ;;  %v167_v33 = vsel %vm159_vm1, %v145_v24, %v163_v27 }
  0xe5   :  { %v150_v34 = vadd.f32 %v149_v32, %v53_v21  ;;  %v166_v35 = vsel %vm158_vm2, %v140_v26, %v162_v29 }
  0xe6   :  { %vm161_vm3 = vcmp.gt.f32.partialorder %v155_v31, 0.0  ;;  %v165_v36 = vmul.f32 0.2, %v155_v31  ;;  %v483_v37 = vpack.c.bf16 %v167_v33, %v166_v35 }
  0xe7   :  { %vm160_vm4 = vcmp.gt.f32.partialorder %v150_v34, 0.0  ;;  %v164_v38 = vmul.f32 0.2, %v150_v34 }
  0xe8   :  { %484 = vmatprep.subr.bf16.mxu1 %v483_v37  ;;  %v169_v39 = vsel %vm161_vm3, %v155_v31, %v165_v36 }
  0xe9   :  { %486 = vmatpush3.bf16.msra.mxu1 %v483_v37  ;;  %v168_v40 = vsel %vm160_vm4, %v150_v34, %v164_v38 }
  0xea   :  { %v487_v41 = vpack.c.bf16 %v169_v39, %v168_v40 }
  0xec   :  { %488 = vmatprep.subr.bf16.mxu1 %v487_v41 }
  0xed   :  { %490 = vmatpush3.bf16.msra.mxu1 %v487_v41 }
  0xf0   :  { %459 = vmatmul.mubr.msk.f32.vlgmr.msra.gmra.mrb[0].mxu1 %vm60_vm0, %v171_v42 }
  0xf1   :  { %461 = vmatprep.mubr.msk.f32.mxu1 %vm60_vm0, %v172_v43 }
  0xf4   :  { %462 = vmatmul.mubr.msk.f32.gmra.mrb[2].mxu1 %vm60_vm0, %v173_v44 }
 0x1c3   :  { %v460_v49 = vpop.f32.mrb[0].mxu1 }
 0x1c4   :  { %v282_v50 = vadd.f32 %v460_v49, %v186_v47  ;;  %v276_v51 = vpop.f32.mrb[1].mxu1 }
 0x1c5   :  { %v277_v52 = vadd.f32 %v276_v51, %v181_v48 }
 0x1c6   :  { %vm296_vm6 = vcmp.gt.f32.partialorder %v282_v50, 0.0  ;;  %v300_v53 = vmul.f32 0.2, %v282_v50 }
 0x1c7   :  { %vm295_vm7 = vcmp.gt.f32.partialorder %v277_v52, 0.0  ;;  %v299_v55 = vmul.f32 0.2, %v277_v52  ;;  %v463_v56 = vpop.f32.mrb[2].mxu1 }
 0x1c8   :  { %v304_v58 = vsel %vm296_vm6, %v282_v50, %v300_v53  ;;  %v292_v59 = vadd.f32 %v463_v56, %v196_v54  ;;  %v286_v60 = vpop.f32.mrb[3].mxu1 }
 0x1c9   :  { %v303_v61 = vsel %vm295_vm7, %v277_v52, %v299_v55  ;;  %v287_v62 = vadd.f32 %v286_v60, %v191_v57 }
 0x1ca   :  { %v492_v63 = vpack.c.bf16 %v304_v58, %v303_v61  ;;  %vm298_vm8 = vcmp.gt.f32.partialorder %v292_v59, 0.0  ;;  %v302_v0 = vmul.f32 0.2, %v292_v59 }
 0x1cb   :  { %vm297_vm9 = vcmp.gt.f32.partialorder %v287_v62, 0.0  ;;  %v301_v1 = vmul.f32 0.2, %v287_v62 }
 0x1cc   :  { %v306_v2 = vsel %vm298_vm8, %v292_v59, %v302_v0  ;;  %493 = vmatpush3.bf16.msra.mxu0 %v492_v63 }
 0x1cd   :  { %v305_v3 = vsel %vm297_vm9, %v287_v62, %v301_v1  ;;  %494 = vmatprep.subr.bf16.mxu0 %v533_v45 }
 0x1ce   :  { %v495_v4 = vpack.c.bf16 %v306_v2, %v305_v3 }
 0x1d0   :  { %496 = vmatpush3.bf16.msra.mxu0 %v495_v4 }
 0x1d3   :  { %473 = vmatmul.mubr.msk.f32.vlgmr.msra.gmra.mrb[4].mxu0 %vm60_vm0, %v307_v5 }
 0x2a6   :  { %v379_v7 = vpop.f32.mrb[4].mxu0 }
 0x2a7   :  { %v380_v8 = vadd.f32 %v379_v7, %v309_v6  ;;  %v474_v9 = vpop.f32.mrb[5].mxu0 }
 0x2a9   :  { %v414_v10 = vmul.f32 -1.442695, %v380_v8 }
 0x2ab   :  { %504 = vpow2.f32 %v414_v10 }
 0x2b5   :  { %v505_v11 = vpop.eup %504 }
 0x2b6   :  { %v386_v12 = vadd.f32 1.0, %v505_v11 }
 0x2b8   :  { %506 = vrcp.f32 %v386_v12 }
 0x2c2   :  { %v507_v13 = vpop.eup %506 }
 0x2c3   :  { %390 = vst.msk [vmem:[#allocation3] sm:$0x1] %vm389_vm10, %v507_v13 }
 0x2c4   :  { %519 = shalt.err (!%p516_p4)
}
 0x2c5   :  { %s520_s20 = scalar_lea.hbm %s671_s7, 16 }
 0x2c6   :  { %p521_p5 = scmp.ne.s32.totalorder %s671_s7, %s520_s20  ;;  %p524_p6 = scmp.lt.u32.totalorder %s520_s20, %s671_s7 }
 0x2c8   :  { %p526_p7 = pnand %p524_p6, %p521_p5 }
 0x2ca   :  { %529 = shalt.err (!%p526_p7)
}
 0x2cb   :  { %400 = dma.vmem_to_hbm [thread:$0]  %s398_s17, 16, %s671_s7, [#allocation4]  }
 0x2cc   :  { %530 = dma.done.wait [#allocation4], 16  }
 0x2cd   :  { %531 = vsyncadd [#allocation4], 4294967280 }
 0x2ce   :  { %404 = vsyncpa [#allocation4], 1 }

</bundles_post_ra>
